<compile_context>
chip_gen: v5e
topology: v5e:2x2
jax: 0.10.0
libtpu: 0.0.40
codegen_flags: <defaults>
</compile_context>

<pallas_src>
import jax
import jax.numpy as jnp
from jax.experimental import pallas as pl
from jax.experimental.pallas import tpu as pltpu

IN_FEATURES = 32 * 32 * 3   # 3072
HIDDEN = 128
OUT = 1
TM_MAX = 512                # bf16 x tile: 512*3072*2B = 3 MiB per buffer


def _round_up(n, m):
    return ((n + m - 1) // m) * m


def _disc_kernel(x_ref, w1_ref, b1_ref, w2_ref, b2_ref, o_ref):
    # x_ref: (TM, 3072) bf16, w1_ref: (3072, 128) bf16 (resident),
    # b1_ref: (1, 128) f32, w2_ref: (128, 1) f32, b2_ref: (1, 1) f32 in SMEM.
    h = jnp.dot(x_ref[...], w1_ref[...],
                preferred_element_type=jnp.float32)          # (TM, 128) f32
    h = jnp.maximum(h + b1_ref[...], 0.0)                    # bias + ReLU
    y = jnp.dot(h, w2_ref[...],
                preferred_element_type=jnp.float32)          # (TM, 1) f32
    o_ref[...] = y + b2_ref[0, 0]                            # scalar bias from SMEM


def discriminator_forward(x_nchw, w1, b1, w2, b2):
    """x_nchw: (B, 3, 32, 32). Returns (B, 1) float32."""
    B = x_nchw.shape[0]
    x_flat = x_nchw.reshape(B, IN_FEATURES)

    # Producer cast to bf16 (halves HBM traffic into the kernel).
    x_bf16 = x_flat.astype(jnp.bfloat16)
    w1_bf16 = w1.astype(jnp.bfloat16)   # in a real model, store weights as bf16

    # Batch tile: multiple of 8 sublanes, capped at TM_MAX (VMEM-safe on
    # v5e/v6e/v7x scoped defaults). Pad only when B is not a tile multiple.
    TM = min(TM_MAX, _round_up(B, 8))
    Bp = _round_up(B, TM)
    if Bp != B:
        x_bf16 = jnp.pad(x_bf16, ((0, Bp - B), (0, 0)))
    num_tiles = Bp // TM

    out = pl.pallas_call(
        _disc_kernel,
        out_shape=jax.ShapeDtypeStruct((Bp, OUT), jnp.float32),
        grid_spec=pltpu.PrefetchScalarGridSpec(
            num_scalar_prefetch=0,
            grid=(num_tiles,),
            in_specs=[
                # x: one batch tile per grid step (double-buffered by Pallas).
                pl.BlockSpec((TM, IN_FEATURES), lambda i: (i, 0)),
                # W1 / b1 / W2: constant index_map -> resident in VMEM.
                pl.BlockSpec((IN_FEATURES, HIDDEN), lambda i: (0, 0)),
                pl.BlockSpec((1, HIDDEN), lambda i: (0, 0)),
                pl.BlockSpec((HIDDEN, OUT), lambda i: (0, 0)),
                # b2: single scalar, lives in SMEM (no padded VMEM tile).
                pl.BlockSpec(memory_space=pltpu.MemorySpace.SMEM),
            ],
            out_specs=pl.BlockSpec((TM, OUT), lambda i: (i, 0)),
        ),
        compiler_params=pltpu.CompilerParams(
            # Independent batch tiles: lets v7x shard across its 2 TensorCores.
            dimension_semantics=("parallel",)),
    )(x_bf16, w1_bf16, b1, w2, b2)

    return out[:B]


def init_params(key):
    """Deterministic init mimicking PyTorch nn.Linear (uniform +/- 1/sqrt(fan_in))."""
    k1, k2, k3, k4 = jax.random.split(key, 4)
    bound1 = 1.0 / jnp.sqrt(jnp.float32(IN_FEATURES))
    bound2 = 1.0 / jnp.sqrt(jnp.float32(HIDDEN))
    # Stored as (in, out): transposed vs. PyTorch's (out, in).
    w1 = jax.random.uniform(k1, (IN_FEATURES, HIDDEN), jnp.float32, -bound1, bound1)
    b1 = jax.random.uniform(k2, (1, HIDDEN), jnp.float32, -bound1, bound1)
    w2 = jax.random.uniform(k3, (HIDDEN, OUT), jnp.float32, -bound2, bound2)
    b2 = jax.random.uniform(k4, (1, OUT), jnp.float32, -bound2, bound2)
    return w1, b1, w2, b2


if __name__ == "__main__":
    key = jax.random.PRNGKey(0)
    kx, kp = jax.random.split(key)

    B = 2
    x = jax.random.normal(kx, (B, 3, 32, 32), jnp.float32)   # NCHW, like PyTorch
    w1, b1, w2, b2 = init_params(kp)

    out = discriminator_forward(x, w1, b1, w2, b2)
    out = jax.block_until_ready(out)

    # Reference in plain JAX with the same bf16 input/weight quantization
    # (accumulation in f32), matching the PyTorch module's math.
    x_flat = x.reshape(B, IN_FEATURES)
    xq = x_flat.astype(jnp.bfloat16).astype(jnp.float32)
    w1q = w1.astype(jnp.bfloat16).astype(jnp.float32)
    ref = jnp.maximum(xq @ w1q + b1, 0.0) @ w2 + b2

    assert out.shape == (B, 1)
    assert jnp.allclose(out, ref, atol=2e-3, rtol=2e-3), "mismatch vs reference"

    print("KERNEL_OK")
</pallas_src>

<mosaic_0001>
module attributes {stable_mosaic.version = 11 : i64} {
  func.func @_disc_kernel(%arg0: i32, %arg1: memref<8x3072xbf16, #tpu.memory_space<vmem>>, %arg2: memref<3072x128xbf16, #tpu.memory_space<vmem>>, %arg3: memref<1x128xf32, #tpu.memory_space<vmem>>, %arg4: memref<128x1xf32, #tpu.memory_space<vmem>>, %arg5: memref<1x1xf32, #tpu.memory_space<smem>>, %arg6: memref<8x1xf32, #tpu.memory_space<vmem>>) attributes {dimension_semantics = [#tpu.dimension_semantics<parallel>], iteration_bounds = array<i64: 1>, scalar_prefetch = 0 : i64, scratch_operands = 0 : i64, tpu.core_type = #tpu.core_type<tc>, window_params = [{transform_indices = @transform_0, window_bounds = array<i64: 8, 3072>}, {pipeline_mode = #tpu.pipeline_mode<synchronous>, transform_indices = @transform_1, window_bounds = array<i64: 3072, 128>}, {pipeline_mode = #tpu.pipeline_mode<synchronous>, transform_indices = @transform_2, window_bounds = array<i64: 1, 128>}, {pipeline_mode = #tpu.pipeline_mode<synchronous>, transform_indices = @transform_3, window_bounds = array<i64: 128, 1>}, {transform_indices = @transform_4, window_bounds = array<i64: 1, 1>}, {transform_indices = @transform_5, window_bounds = array<i64: 8, 1>}]} {
    %c0 = arith.constant 0 : index
    %c0_0 = arith.constant 0 : index
    %0 = vector.load %arg1[%c0, %c0_0] : memref<8x3072xbf16, #tpu.memory_space<vmem>>, vector<8x3072xbf16>
    %c0_1 = arith.constant 0 : index
    %c0_2 = arith.constant 0 : index
    %1 = vector.load %arg2[%c0_1, %c0_2] : memref<3072x128xbf16, #tpu.memory_space<vmem>>, vector<3072x128xbf16>
    %cst = arith.constant dense<0.000000e+00> : vector<8x128xf32>
    %2 = tpu.matmul %0, %1, %cst {dimension_numbers = #tpu.dot_dimension_numbers<[1], [0], [0], [1], [0, 0, 1, 1], [], []>} : vector<8x3072xbf16>, vector<3072x128xbf16>, vector<8x128xf32> -> vector<8x128xf32>
    %c0_3 = arith.constant 0 : index
    %c0_4 = arith.constant 0 : index
    %3 = vector.load %arg3[%c0_3, %c0_4] : memref<1x128xf32, #tpu.memory_space<vmem>>, vector<1x128xf32>
    %4 = vector.broadcast %3 : vector<1x128xf32> to vector<8x128xf32>
    %5 = arith.addf %2, %4 : vector<8x128xf32>
    %cst_5 = arith.constant 0.000000e+00 : f32
    %6 = vector.broadcast %cst_5 : f32 to vector<8x128xf32>
    %7 = arith.maximumf %5, %6 : vector<8x128xf32>
    %c0_6 = arith.constant 0 : index
    %c0_7 = arith.constant 0 : index
    %8 = vector.load %arg4[%c0_6, %c0_7] : memref<128x1xf32, #tpu.memory_space<vmem>>, vector<128x1xf32>
    %cst_8 = arith.constant dense<0.000000e+00> : vector<8x1xf32>
    %9 = tpu.matmul %7, %8, %cst_8 {dimension_numbers = #tpu.dot_dimension_numbers<[1], [0], [0], [1], [0, 0, 1, 1], [], []>} : vector<8x128xf32>, vector<128x1xf32>, vector<8x1xf32> -> vector<8x1xf32>
    %c0_9 = arith.constant 0 : index
    %c0_10 = arith.constant 0 : index
    %10 = memref.load %arg5[%c0_9, %c0_10] : memref<1x1xf32, #tpu.memory_space<smem>>
    %11 = vector.broadcast %10 : f32 to vector<8x1xf32>
    %12 = arith.addf %9, %11 : vector<8x1xf32>
    %c0_11 = arith.constant 0 : index
    %c0_12 = arith.constant 0 : index
    %13 = vector.load %arg6[%c0_11, %c0_12] : memref<8x1xf32, #tpu.memory_space<vmem>>, vector<8x1xf32>
    tpu.vector_store %arg6[%c0_11, %c0_12], %12 {strides = array<i32>} : memref<8x1xf32, #tpu.memory_space<vmem>>, vector<8x1xf32>,
    return
  }
  func.func @transform_0(%arg0: i32) -> (i32, i32) {
    %c0_i32 = arith.constant 0 : i32
    %c0_i32_0 = arith.constant 0 : i32
    return %arg0, %c0_i32 : i32, i32
  }
  func.func @transform_1(%arg0: i32) -> (i32, i32) {
    %c0_i32 = arith.constant 0 : i32
    %c0_i32_0 = arith.constant 0 : i32
    %c0_i32_1 = arith.constant 0 : i32
    return %c0_i32, %c0_i32_0 : i32, i32
  }
  func.func @transform_2(%arg0: i32) -> (i32, i32) {
    %c0_i32 = arith.constant 0 : i32
    %c0_i32_0 = arith.constant 0 : i32
    %c0_i32_1 = arith.constant 0 : i32
    return %c0_i32, %c0_i32_0 : i32, i32
  }
  func.func @transform_3(%arg0: i32) -> (i32, i32) {
    %c0_i32 = arith.constant 0 : i32
    %c0_i32_0 = arith.constant 0 : i32
    %c0_i32_1 = arith.constant 0 : i32
    return %c0_i32, %c0_i32_0 : i32, i32
  }
  func.func @transform_4(%arg0: i32) -> (i32, i32) {
    %c0_i32 = arith.constant 0 : i32
    %c0_i32_0 = arith.constant 0 : i32
    %c0_i32_1 = arith.constant 0 : i32
    return %c0_i32, %c0_i32_0 : i32, i32
  }
  func.func @transform_5(%arg0: i32) -> (i32, i32) {
    %c0_i32 = arith.constant 0 : i32
    %c0_i32_0 = arith.constant 0 : i32
    return %arg0, %c0_i32 : i32, i32
  }
}

</mosaic_0001>

<bundles_post_ra>
// kernel: tpu_custom_call.1
= control target key start
LH: loop header
LB: loop body
LE: loop exit
PB: predicated region body
PF: predicated region fallthrough
CT: control target
= control target key end

     0   :  { %11 = vsyncpa [#allocation4], 0  ;;  %s3021_s21 = smov [#allocation3]   ;;  %s3022_s23 = smov 64   ;;  %s3150_s0 = inlined_call_operand.vmem [shape: bf16[8,3072], index: 0, kind: input, shape index: {}]   ;;  %s3151_s1 = inlined_call_operand.hbm [shape: bf16[3072,128], index: 1, kind: input, shape index: {}]   ;;  %s3152_s2 = inlined_call_operand.vmem [shape: f32[1,128], index: 2, kind: input, shape index: {}]   ;;  %s3153_s3 = inlined_call_operand.vmem [shape: f32[128,1], index: 3, kind: input, shape index: {}]   ;;  %s3154_s4 = inlined_call_operand.<no memory space> [shape: f32[1,1], index: 4, kind: input, shape index: {}]   ;;  %s3155_s5 = inlined_call_operand.vmem [shape: f32[8,1], index: 5, kind: output, shape index: {}]  }
   0x1   :  { %s18_s20 = sshll.u32 %s3151_s1, 4  ;;  %s20_s22 = sshll.u32 %s3021_s21, 4  ;;  %s19_s20 = int_to_ptr.hbm [resolvable:$true] %s18_s20  ;;  %s21_s22 = int_to_ptr.vmem [resolvable:$true] %s20_s22 }
   0x2   :  { %s3023_s24 = smov 4  }
   0x3   :  { %26 = dma.hbm_to_vmem [thread:$0]  %s19_s20, 24576, %s21_s22, [#allocation4], %s3022_s23, %s3022_s23, %s3023_s24  }
   0x4   :  { %3019 = dma.done.wait [#allocation4], 24576  }
   0x5   :  { %3020 = vsyncadd [#allocation4], 4294942720  ;;  %v2806_v0 = vld [vmem:[#allocation3 + $0x38] sm:$0xff]  ;;  %v2805_v4 = vld [vmem:[#allocation3 + $0x30] sm:$0xff]  ;;  %vm2024_vm0 = vcmask 7168  }
   0x6   :  { %v2814_v1 = vld [vmem:[#allocation3 + $0x78] sm:$0xff]  ;;  %1673 = vmatpush.bf16.msra.mxu0 %v2806_v0  ;;  %v2813_v5 = vld [vmem:[#allocation3 + $0x70] sm:$0xff]  ;;  %v2804_v8 = vld [vmem:[#allocation3 + $0x28] sm:$0xff] }
   0x7   :  { %v2822_v2 = vld [vmem:[#allocation3 + $0xb8] sm:$0xff]  ;;  %1686 = vmatpush.bf16.msra.mxu1 %v2814_v1  ;;  %v2821_v6 = vld [vmem:[#allocation3 + $0xb0] sm:$0xff]  ;;  %v2812_v9 = vld [vmem:[#allocation3 + $0x68] sm:$0xff] }
   0x8   :  { %v2830_v3 = vld [vmem:[#allocation3 + $0xf8] sm:$0xff]  ;;  %1699 = vmatpush.bf16.msra.mxu2 %v2822_v2  ;;  %v2829_v7 = vld [vmem:[#allocation3 + $0xf0] sm:$0xff]  ;;  %v2820_v10 = vld [vmem:[#allocation3 + $0xa8] sm:$0xff] }
   0x9   :  { %1712 = vmatpush.bf16.msra.mxu3 %v2830_v3  ;;  %v2828_v11 = vld [vmem:[#allocation3 + $0xe8] sm:$0xff]  ;;  %v2803_v12 = vld [vmem:[#allocation3 + $0x20] sm:$0xff]  ;;  %v2802_v16 = vld [vmem:[#allocation3 + $0x18] sm:$0xff] }
   0xa   :  { %1674 = vmatpush.bf16.msra.mxu0 %v2805_v4  ;;  %v2811_v13 = vld [vmem:[#allocation3 + $0x60] sm:$0xff]  ;;  %v2810_v17 = vld [vmem:[#allocation3 + $0x58] sm:$0xff]  ;;  %v2801_v20 = vld [vmem:[#allocation3 + $0x10] sm:$0xff] }
   0xb   :  { %1687 = vmatpush.bf16.msra.mxu1 %v2813_v5  ;;  %v2819_v14 = vld [vmem:[#allocation3 + $0xa0] sm:$0xff]  ;;  %v2818_v18 = vld [vmem:[#allocation3 + $0x98] sm:$0xff]  ;;  %v2809_v21 = vld [vmem:[#allocation3 + $0x50] sm:$0xff] }
   0xc   :  { %1700 = vmatpush.bf16.msra.mxu2 %v2821_v6  ;;  %v2827_v15 = vld [vmem:[#allocation3 + $0xe0] sm:$0xff]  ;;  %v2826_v19 = vld [vmem:[#allocation3 + $0xd8] sm:$0xff]  ;;  %v2817_v22 = vld [vmem:[#allocation3 + $0x90] sm:$0xff] }
   0xd   :  { %1713 = vmatpush.bf16.msra.mxu3 %v2829_v7  ;;  %v2825_v23 = vld [vmem:[#allocation3 + $0xd0] sm:$0xff]  ;;  %v2800_v24 = vld [vmem:[#allocation3 + $0x8] sm:$0xff]  ;;  %v37_v29 = vld [vmem:[%s3150_s0] sm:$0xff] }
   0xe   :  { %1675 = vmatpush.bf16.msra.mxu0 %v2804_v8  ;;  %v2808_v25 = vld [vmem:[#allocation3 + $0x48] sm:$0xff]  ;;  %v2799_v30 = vld [vmem:[#allocation3] sm:$0xff]  ;;  %v449_v33 = vunpack.c.l.b16 %v37_v29  ;;  %v450_v37 = vunpack.c.h.b16 %v37_v29  ;;  %v2838_v38 = vld [vmem:[#allocation3 + $0x138] sm:$0xff] }
   0xf   :  { %1688 = vmatpush.bf16.msra.mxu1 %v2812_v9  ;;  %v2816_v26 = vld [vmem:[#allocation3 + $0x88] sm:$0xff]  ;;  %v2807_v31 = vld [vmem:[#allocation3 + $0x40] sm:$0xff]  ;;  %v2846_v39 = vld [vmem:[#allocation3 + $0x178] sm:$0xff] }
  0x10   :  { %1701 = vmatpush.bf16.msra.mxu2 %v2820_v10  ;;  %v2824_v27 = vld [vmem:[#allocation3 + $0xc8] sm:$0xff]  ;;  %v2815_v34 = vld [vmem:[#allocation3 + $0x80] sm:$0xff]  ;;  %v2854_v40 = vld [vmem:[#allocation3 + $0x1b8] sm:$0xff]  ;;  %v473_v43 = vpack.c.b16 %v449_v33, %v449_v33  ;;  %v474_v45 = vpack.c.b16 %v450_v37, %v450_v37 }
  0x11   :  { %1714 = vmatpush.bf16.msra.mxu3 %v2828_v11  ;;  %v38_v28 = vld [vmem:[%s3150_s0 + $0x8] sm:$0xff]  ;;  %v2823_v35 = vld [vmem:[#allocation3 + $0xc0] sm:$0xff]  ;;  %v2862_v41 = vld [vmem:[#allocation3 + $0x1f8] sm:$0xff] }
  0x12   :  { %1676 = vmatpush.bf16.msra.mxu0 %v2803_v12  ;;  %v451_v32 = vunpack.c.l.b16 %v38_v28  ;;  %v452_v36 = vunpack.c.h.b16 %v38_v28  ;;  %v2837_v46 = vld [vmem:[#allocation3 + $0x130] sm:$0xff]  ;;  %v2836_v50 = vld [vmem:[#allocation3 + $0x128] sm:$0xff]  ;;  %v2835_v54 = vld [vmem:[#allocation3 + $0x120] sm:$0xff] }
  0x13   :  { %1689 = vmatpush.bf16.msra.mxu1 %v2811_v13  ;;  %v2845_v47 = vld [vmem:[#allocation3 + $0x170] sm:$0xff]  ;;  %v2844_v51 = vld [vmem:[#allocation3 + $0x168] sm:$0xff]  ;;  %v2843_v55 = vld [vmem:[#allocation3 + $0x160] sm:$0xff] }
  0x14   :  { %1702 = vmatpush.bf16.msra.mxu2 %v2819_v14  ;;  %v475_v42 = vpack.c.b16 %v451_v32, %v451_v32  ;;  %v476_v44 = vpack.c.b16 %v452_v36, %v452_v36  ;;  %v2853_v48 = vld [vmem:[#allocation3 + $0x1b0] sm:$0xff]  ;;  %v2852_v52 = vld [vmem:[#allocation3 + $0x1a8] sm:$0xff]  ;;  %v2851_v56 = vld [vmem:[#allocation3 + $0x1a0] sm:$0xff] }
  0x15   :  { %1715 = vmatpush.bf16.msra.mxu3 %v2827_v15  ;;  %v2861_v49 = vld [vmem:[#allocation3 + $0x1f0] sm:$0xff]  ;;  %v2860_v53 = vld [vmem:[#allocation3 + $0x1e8] sm:$0xff]  ;;  %v2859_v57 = vld [vmem:[#allocation3 + $0x1e0] sm:$0xff] }
  0x16   :  { %1677 = vmatpush.bf16.msra.mxu0 %v2802_v16  ;;  %v2834_v58 = vld [vmem:[#allocation3 + $0x118] sm:$0xff]  ;;  %v2833_v62 = vld [vmem:[#allocation3 + $0x110] sm:$0xff]  ;;  %v2832_v2 = vld [vmem:[#allocation3 + $0x108] sm:$0xff] }
  0x17   :  { %1690 = vmatpush.bf16.msra.mxu1 %v2810_v17  ;;  %v2842_v59 = vld [vmem:[#allocation3 + $0x158] sm:$0xff]  ;;  %v2841_v63 = vld [vmem:[#allocation3 + $0x150] sm:$0xff]  ;;  %v2840_v3 = vld [vmem:[#allocation3 + $0x148] sm:$0xff] }
  0x18   :  { %1703 = vmatpush.bf16.msra.mxu2 %v2818_v18  ;;  %v2850_v60 = vld [vmem:[#allocation3 + $0x198] sm:$0xff]  ;;  %v2849_v0 = vld [vmem:[#allocation3 + $0x190] sm:$0xff]  ;;  %v2848_v4 = vld [vmem:[#allocation3 + $0x188] sm:$0xff] }
  0x19   :  { %1716 = vmatpush.bf16.msra.mxu3 %v2826_v19  ;;  %v2858_v61 = vld [vmem:[#allocation3 + $0x1d8] sm:$0xff]  ;;  %v2857_v1 = vld [vmem:[#allocation3 + $0x1d0] sm:$0xff]  ;;  %v2856_v5 = vld [vmem:[#allocation3 + $0x1c8] sm:$0xff] }
  0x1a   :  { %1678 = vmatpush.bf16.msra.mxu0 %v2801_v20  ;;  %v40_v6 = vld [vmem:[%s3150_s0 + $0x18] sm:$0xff]  ;;  %v39_v7 = vld [vmem:[%s3150_s0 + $0x10] sm:$0xff]  ;;  %v2831_v8 = vld [vmem:[#allocation3 + $0x100] sm:$0xff] }
  0x1b   :  { %1691 = vmatpush.bf16.msra.mxu1 %v2809_v21  ;;  %v2839_v9 = vld [vmem:[#allocation3 + $0x140] sm:$0xff]  ;;  %v455_v10 = vunpack.c.l.b16 %v40_v6  ;;  %v453_v11 = vunpack.c.l.b16 %v39_v7  ;;  %v456_v14 = vunpack.c.h.b16 %v40_v6  ;;  %v454_v15 = vunpack.c.h.b16 %v39_v7  ;;  %v2870_v16 = vld [vmem:[#allocation3 + $0x238] sm:$0xff]  ;;  %v2868_v28 = vld [vmem:[#allocation3 + $0x228] sm:$0xff] }
  0x1c   :  { %1704 = vmatpush.bf16.msra.mxu2 %v2817_v22  ;;  %v2847_v12 = vld [vmem:[#allocation3 + $0x180] sm:$0xff]  ;;  %v2878_v17 = vld [vmem:[#allocation3 + $0x278] sm:$0xff]  ;;  %v2876_v29 = vld [vmem:[#allocation3 + $0x268] sm:$0xff] }
  0x1d   :  { %1717 = vmatpush.bf16.msra.mxu3 %v2825_v23  ;;  %v2855_v13 = vld [vmem:[#allocation3 + $0x1c0] sm:$0xff]  ;;  %v2886_v18 = vld [vmem:[#allocation3 + $0x2b8] sm:$0xff]  ;;  %v479_v20 = vpack.c.b16 %v455_v10, %v455_v10  ;;  %v477_v21 = vpack.c.b16 %v453_v11, %v453_v11  ;;  %v480_v22 = vpack.c.b16 %v456_v14, %v456_v14  ;;  %v478_v23 = vpack.c.b16 %v454_v15, %v454_v15  ;;  %v2900_v6 = vld [vmem:[#allocation3 + $0x328] sm:$0xff] }
  0x1e   :  { %1679 = vmatpush.bf16.msra.mxu0 %v2800_v24  ;;  %v2894_v19 = vld [vmem:[#allocation3 + $0x2f8] sm:$0xff]  ;;  %v2869_v24 = vld [vmem:[#allocation3 + $0x230] sm:$0xff]  ;;  %v2867_v32 = vld [vmem:[#allocation3 + $0x220] sm:$0xff] }
  0x1f   :  { %1692 = vmatpush.bf16.msra.mxu1 %v2808_v25  ;;  %v2877_v25 = vld [vmem:[#allocation3 + $0x270] sm:$0xff]  ;;  %v2875_v33 = vld [vmem:[#allocation3 + $0x260] sm:$0xff]  ;;  %v2866_v36 = vld [vmem:[#allocation3 + $0x218] sm:$0xff] }
  0x20   :  { %1705 = vmatpush.bf16.msra.mxu2 %v2816_v26  ;;  %v2885_v26 = vld [vmem:[#allocation3 + $0x2b0] sm:$0xff]  ;;  %v2874_v37 = vld [vmem:[#allocation3 + $0x258] sm:$0xff]  ;;  %v2908_v7 = vld [vmem:[#allocation3 + $0x368] sm:$0xff] }
  0x21   :  { %1718 = vmatpush.bf16.msra.mxu3 %v2824_v27  ;;  %v2893_v27 = vld [vmem:[#allocation3 + $0x2f0] sm:$0xff]  ;;  %v2899_v10 = vld [vmem:[#allocation3 + $0x320] sm:$0xff]  ;;  %v2898_v14 = vld [vmem:[#allocation3 + $0x318] sm:$0xff] }
  0x22   :  { %1680 = vmatpush.bf16.msra.mxu0 %v2799_v30  ;;  %v2884_v30 = vld [vmem:[#allocation3 + $0x2a8] sm:$0xff]  ;;  %v2907_v11 = vld [vmem:[#allocation3 + $0x360] sm:$0xff]  ;;  %v2906_v15 = vld [vmem:[#allocation3 + $0x358] sm:$0xff] }
  0x23   :  { %1693 = vmatpush.bf16.msra.mxu1 %v2807_v31  ;;  %v2892_v31 = vld [vmem:[#allocation3 + $0x2e8] sm:$0xff] }
  0x24   :  { %1706 = vmatpush.bf16.msra.mxu2 %v2815_v34  ;;  %v2883_v34 = vld [vmem:[#allocation3 + $0x2a0] sm:$0xff] }
  0x25   :  { %1719 = vmatpush.bf16.msra.mxu3 %v2823_v35  ;;  %1681 = vmatmul.bf16.vlgmr.msra.gmra.mxu0 %v473_v43  ;;  %v2891_v35 = vld [vmem:[#allocation3 + $0x2e0] sm:$0xff]  ;;  %v2889_v43 = vld [vmem:[#allocation3 + $0x2d0] sm:$0xff] }
  0x26   :  { %1725 = vmatpush.bf16.msrb.mxu0 %v2838_v38  ;;  %1694 = vmatmul.bf16.vlgmr.msra.gmra.mxu1 %v474_v45  ;;  %v2882_v38 = vld [vmem:[#allocation3 + $0x298] sm:$0xff]  ;;  %v2872_v45 = vld [vmem:[#allocation3 + $0x248] sm:$0xff] }
  0x27   :  { %1738 = vmatpush.bf16.msrb.mxu1 %v2846_v39  ;;  %1707 = vmatmul.bf16.vlgmr.msra.gmra.mxu2 %v475_v42  ;;  %v2890_v39 = vld [vmem:[#allocation3 + $0x2d8] sm:$0xff]  ;;  %v2881_v42 = vld [vmem:[#allocation3 + $0x290] sm:$0xff] }
  0x28   :  { %1751 = vmatpush.bf16.msrb.mxu2 %v2854_v40  ;;  %1720 = vmatmul.bf16.vlgmr.msra.gmra.mxu3 %v476_v44  ;;  %v2865_v40 = vld [vmem:[#allocation3 + $0x210] sm:$0xff]  ;;  %v2864_v44 = vld [vmem:[#allocation3 + $0x208] sm:$0xff] }
  0x29   :  { %1764 = vmatpush.bf16.msrb.mxu3 %v2862_v41  ;;  %v2873_v41 = vld [vmem:[#allocation3 + $0x250] sm:$0xff] }
  0x2a   :  { %1726 = vmatpush.bf16.msrb.mxu0 %v2837_v46  ;;  %v2880_v46 = vld [vmem:[#allocation3 + $0x288] sm:$0xff] }
  0x2b   :  { %1739 = vmatpush.bf16.msrb.mxu1 %v2845_v47  ;;  %v2888_v47 = vld [vmem:[#allocation3 + $0x2c8] sm:$0xff] }
  0x2c   :  { %1752 = vmatpush.bf16.msrb.mxu2 %v2853_v48  ;;  %v41_v48 = vld [vmem:[%s3150_s0 + $0x20] sm:$0xff] }
  0x2d   :  { %1765 = vmatpush.bf16.msrb.mxu3 %v2861_v49  ;;  %v42_v49 = vld [vmem:[%s3150_s0 + $0x28] sm:$0xff] }
  0x2e   :  { %1727 = vmatpush.bf16.msrb.mxu0 %v2836_v50  ;;  %v2863_v50 = vld [vmem:[#allocation3 + $0x200] sm:$0xff] }
  0x2f   :  { %1740 = vmatpush.bf16.msrb.mxu1 %v2844_v51  ;;  %v2871_v51 = vld [vmem:[#allocation3 + $0x240] sm:$0xff] }
  0x30   :  { %1753 = vmatpush.bf16.msrb.mxu2 %v2852_v52  ;;  %v457_v52 = vunpack.c.l.b16 %v41_v48 }
  0x31   :  { %1766 = vmatpush.bf16.msrb.mxu3 %v2860_v53  ;;  %v459_v53 = vunpack.c.l.b16 %v42_v49 }
  0x32   :  { %1728 = vmatpush.bf16.msrb.mxu0 %v2835_v54  ;;  %v2879_v54 = vld [vmem:[#allocation3 + $0x280] sm:$0xff] }
  0x33   :  { %1741 = vmatpush.bf16.msrb.mxu1 %v2843_v55  ;;  %v2887_v55 = vld [vmem:[#allocation3 + $0x2c0] sm:$0xff] }
  0x34   :  { %1754 = vmatpush.bf16.msrb.mxu2 %v2851_v56  ;;  %v458_v56 = vunpack.c.h.b16 %v41_v48  ;;  %v2932_v48 = vld [vmem:[#allocation3 + $0x428] sm:$0xff] }
  0x35   :  { %1767 = vmatpush.bf16.msrb.mxu3 %v2859_v57  ;;  %v460_v57 = vunpack.c.h.b16 %v42_v49  ;;  %v2940_v49 = vld [vmem:[#allocation3 + $0x468] sm:$0xff] }
  0x36   :  { %1729 = vmatpush.bf16.msrb.mxu0 %v2834_v58  ;;  %v2902_v58 = vld [vmem:[#allocation3 + $0x338] sm:$0xff] }
  0x37   :  { %1742 = vmatpush.bf16.msrb.mxu1 %v2842_v59  ;;  %v2910_v59 = vld [vmem:[#allocation3 + $0x378] sm:$0xff] }
  0x38   :  { %1755 = vmatpush.bf16.msrb.mxu2 %v2850_v60  ;;  %v2918_v60 = vld [vmem:[#allocation3 + $0x3b8] sm:$0xff] }
  0x39   :  { %1768 = vmatpush.bf16.msrb.mxu3 %v2858_v61  ;;  %v2926_v61 = vld [vmem:[#allocation3 + $0x3f8] sm:$0xff] }
  0x3a   :  { %1730 = vmatpush.bf16.msrb.mxu0 %v2833_v62  ;;  %v481_v62 = vpack.c.b16 %v457_v52, %v457_v52  ;;  %v2931_v52 = vld [vmem:[#allocation3 + $0x420] sm:$0xff] }
  0x3b   :  { %1743 = vmatpush.bf16.msrb.mxu1 %v2841_v63  ;;  %v483_v63 = vpack.c.b16 %v459_v53, %v459_v53  ;;  %v2939_v53 = vld [vmem:[#allocation3 + $0x460] sm:$0xff] }
  0x3c   :  { %1756 = vmatpush.bf16.msrb.mxu2 %v2849_v0  ;;  %v482_v0 = vpack.c.b16 %v458_v56, %v458_v56  ;;  %v2930_v56 = vld [vmem:[#allocation3 + $0x418] sm:$0xff] }
  0x3d   :  { %1769 = vmatpush.bf16.msrb.mxu3 %v2857_v1  ;;  %v484_v1 = vpack.c.b16 %v460_v57, %v460_v57  ;;  %v2938_v57 = vld [vmem:[#allocation3 + $0x458] sm:$0xff] }
  0x3e   :  { %1731 = vmatpush.bf16.msrb.mxu0 %v2832_v2  ;;  %v2901_v2 = vld [vmem:[#allocation3 + $0x330] sm:$0xff] }
  0x3f   :  { %1744 = vmatpush.bf16.msrb.mxu1 %v2840_v3  ;;  %v2909_v3 = vld [vmem:[#allocation3 + $0x370] sm:$0xff] }
  0x40   :  { %1757 = vmatpush.bf16.msrb.mxu2 %v2848_v4  ;;  %v2917_v4 = vld [vmem:[#allocation3 + $0x3b0] sm:$0xff] }
  0x41   :  { %1770 = vmatpush.bf16.msrb.mxu3 %v2856_v5  ;;  %v2925_v5 = vld [vmem:[#allocation3 + $0x3f0] sm:$0xff] }
  0x42   :  { %1732 = vmatpush.bf16.msrb.mxu0 %v2831_v8  ;;  %v2916_v8 = vld [vmem:[#allocation3 + $0x3a8] sm:$0xff] }
  0x43   :  { %1745 = vmatpush.bf16.msrb.mxu1 %v2839_v9  ;;  %v2924_v9 = vld [vmem:[#allocation3 + $0x3e8] sm:$0xff] }
  0x44   :  { %1758 = vmatpush.bf16.msrb.mxu2 %v2847_v12  ;;  %v2915_v12 = vld [vmem:[#allocation3 + $0x3a0] sm:$0xff] }
  0x45   :  { %1771 = vmatpush.bf16.msrb.mxu3 %v2855_v13  ;;  %1733 = vmatmul.bf16.vlgmr.msrb.gmra.mxu0 %v477_v21  ;;  %v2923_v13 = vld [vmem:[#allocation3 + $0x3e0] sm:$0xff]  ;;  %v2921_v21 = vld [vmem:[#allocation3 + $0x3d0] sm:$0xff] }
  0x46   :  { %1777 = vmatpush.bf16.msra.mxu0 %v2870_v16  ;;  %1746 = vmatmul.bf16.vlgmr.msrb.gmra.mxu1 %v478_v23  ;;  %v2914_v16 = vld [vmem:[#allocation3 + $0x398] sm:$0xff]  ;;  %v2904_v23 = vld [vmem:[#allocation3 + $0x348] sm:$0xff] }
  0x47   :  { %1790 = vmatpush.bf16.msra.mxu1 %v2878_v17  ;;  %1759 = vmatmul.bf16.vlgmr.msrb.gmra.mxu2 %v479_v20  ;;  %v2922_v17 = vld [vmem:[#allocation3 + $0x3d8] sm:$0xff]  ;;  %v2913_v20 = vld [vmem:[#allocation3 + $0x390] sm:$0xff] }
  0x48   :  { %1803 = vmatpush.bf16.msra.mxu2 %v2886_v18  ;;  %1772 = vmatmul.bf16.vlgmr.msrb.gmra.mxu3 %v480_v22  ;;  %v2897_v18 = vld [vmem:[#allocation3 + $0x310] sm:$0xff]  ;;  %v2896_v22 = vld [vmem:[#allocation3 + $0x308] sm:$0xff] }
  0x49   :  { %1816 = vmatpush.bf16.msra.mxu3 %v2894_v19  ;;  %v2905_v19 = vld [vmem:[#allocation3 + $0x350] sm:$0xff] }
  0x4a   :  { %1778 = vmatpush.bf16.msra.mxu0 %v2869_v24  ;;  %v2912_v24 = vld [vmem:[#allocation3 + $0x388] sm:$0xff] }
  0x4b   :  { %1791 = vmatpush.bf16.msra.mxu1 %v2877_v25  ;;  %v2920_v25 = vld [vmem:[#allocation3 + $0x3c8] sm:$0xff] }
  0x4c   :  { %1804 = vmatpush.bf16.msra.mxu2 %v2885_v26  ;;  %v43_v26 = vld [vmem:[%s3150_s0 + $0x30] sm:$0xff] }
  0x4d   :  { %1817 = vmatpush.bf16.msra.mxu3 %v2893_v27  ;;  %v44_v27 = vld [vmem:[%s3150_s0 + $0x38] sm:$0xff] }
  0x4e   :  { %1779 = vmatpush.bf16.msra.mxu0 %v2868_v28  ;;  %v2895_v28 = vld [vmem:[#allocation3 + $0x300] sm:$0xff] }
  0x4f   :  { %1792 = vmatpush.bf16.msra.mxu1 %v2876_v29  ;;  %v2903_v29 = vld [vmem:[#allocation3 + $0x340] sm:$0xff] }
  0x50   :  { %1805 = vmatpush.bf16.msra.mxu2 %v2884_v30  ;;  %v461_v30 = vunpack.c.l.b16 %v43_v26 }
  0x51   :  { %1818 = vmatpush.bf16.msra.mxu3 %v2892_v31  ;;  %v463_v31 = vunpack.c.l.b16 %v44_v27 }
  0x52   :  { %1780 = vmatpush.bf16.msra.mxu0 %v2867_v32  ;;  %v2911_v32 = vld [vmem:[#allocation3 + $0x380] sm:$0xff] }
  0x53   :  { %1793 = vmatpush.bf16.msra.mxu1 %v2875_v33  ;;  %v2919_v33 = vld [vmem:[#allocation3 + $0x3c0] sm:$0xff] }
  0x54   :  { %1806 = vmatpush.bf16.msra.mxu2 %v2883_v34  ;;  %v462_v34 = vunpack.c.h.b16 %v43_v26  ;;  %v2964_v26 = vld [vmem:[#allocation3 + $0x528] sm:$0xff] }
  0x55   :  { %1819 = vmatpush.bf16.msra.mxu3 %v2891_v35  ;;  %v464_v35 = vunpack.c.h.b16 %v44_v27  ;;  %v2972_v27 = vld [vmem:[#allocation3 + $0x568] sm:$0xff] }
  0x56   :  { %1781 = vmatpush.bf16.msra.mxu0 %v2866_v36  ;;  %v2934_v36 = vld [vmem:[#allocation3 + $0x438] sm:$0xff] }
  0x57   :  { %1794 = vmatpush.bf16.msra.mxu1 %v2874_v37  ;;  %v2942_v37 = vld [vmem:[#allocation3 + $0x478] sm:$0xff] }
  0x58   :  { %1807 = vmatpush.bf16.msra.mxu2 %v2882_v38  ;;  %v2950_v38 = vld [vmem:[#allocation3 + $0x4b8] sm:$0xff] }
  0x59   :  { %1820 = vmatpush.bf16.msra.mxu3 %v2890_v39  ;;  %v2958_v39 = vld [vmem:[#allocation3 + $0x4f8] sm:$0xff] }
  0x5a   :  { %1782 = vmatpush.bf16.msra.mxu0 %v2865_v40  ;;  %v485_v40 = vpack.c.b16 %v461_v30, %v461_v30  ;;  %v2988_v30 = vld [vmem:[#allocation3 + $0x5e8] sm:$0xff] }
  0x5b   :  { %1795 = vmatpush.bf16.msra.mxu1 %v2873_v41  ;;  %v487_v41 = vpack.c.b16 %v463_v31, %v463_v31 }
  0x5c   :  { %1808 = vmatpush.bf16.msra.mxu2 %v2881_v42  ;;  %v486_v42 = vpack.c.b16 %v462_v34, %v462_v34 }
  0x5d   :  { %1821 = vmatpush.bf16.msra.mxu3 %v2889_v43  ;;  %v488_v43 = vpack.c.b16 %v464_v35, %v464_v35 }
  0x5e   :  { %1783 = vmatpush.bf16.msra.mxu0 %v2864_v44  ;;  %v2933_v44 = vld [vmem:[#allocation3 + $0x430] sm:$0xff] }
  0x5f   :  { %1796 = vmatpush.bf16.msra.mxu1 %v2872_v45  ;;  %v2941_v45 = vld [vmem:[#allocation3 + $0x470] sm:$0xff] }
  0x60   :  { %1809 = vmatpush.bf16.msra.mxu2 %v2880_v46  ;;  %v2949_v46 = vld [vmem:[#allocation3 + $0x4b0] sm:$0xff] }
  0x61   :  { %1822 = vmatpush.bf16.msra.mxu3 %v2888_v47  ;;  %v2957_v47 = vld [vmem:[#allocation3 + $0x4f0] sm:$0xff] }
  0x62   :  { %1784 = vmatpush.bf16.msra.mxu0 %v2863_v50  ;;  %v2948_v50 = vld [vmem:[#allocation3 + $0x4a8] sm:$0xff] }
  0x63   :  { %1797 = vmatpush.bf16.msra.mxu1 %v2871_v51  ;;  %v2956_v51 = vld [vmem:[#allocation3 + $0x4e8] sm:$0xff] }
  0x64   :  { %1810 = vmatpush.bf16.msra.mxu2 %v2879_v54  ;;  %v2947_v54 = vld [vmem:[#allocation3 + $0x4a0] sm:$0xff] }
  0x65   :  { %1823 = vmatpush.bf16.msra.mxu3 %v2887_v55  ;;  %1785 = vmatmul.bf16.vlgmr.msra.gmra.mxu0 %v481_v62  ;;  %v2955_v55 = vld [vmem:[#allocation3 + $0x4e0] sm:$0xff]  ;;  %v2945_v62 = vld [vmem:[#allocation3 + $0x490] sm:$0xff] }
  0x66   :  { %1829 = vmatpush.bf16.msrb.mxu0 %v2902_v58  ;;  %1798 = vmatmul.bf16.vlgmr.msra.gmra.mxu1 %v482_v0  ;;  %v2946_v58 = vld [vmem:[#allocation3 + $0x498] sm:$0xff]  ;;  %v2928_v0 = vld [vmem:[#allocation3 + $0x408] sm:$0xff] }
  0x67   :  { %1842 = vmatpush.bf16.msrb.mxu1 %v2910_v59  ;;  %1811 = vmatmul.bf16.vlgmr.msra.gmra.mxu2 %v483_v63  ;;  %v2954_v59 = vld [vmem:[#allocation3 + $0x4d8] sm:$0xff]  ;;  %v2953_v63 = vld [vmem:[#allocation3 + $0x4d0] sm:$0xff] }
  0x68   :  { %1855 = vmatpush.bf16.msrb.mxu2 %v2918_v60  ;;  %1824 = vmatmul.bf16.vlgmr.msra.gmra.mxu3 %v484_v1  ;;  %v2929_v60 = vld [vmem:[#allocation3 + $0x410] sm:$0xff]  ;;  %v2936_v1 = vld [vmem:[#allocation3 + $0x448] sm:$0xff] }
  0x69   :  { %1868 = vmatpush.bf16.msrb.mxu3 %v2926_v61  ;;  %v2937_v61 = vld [vmem:[#allocation3 + $0x450] sm:$0xff] }
  0x6a   :  { %1830 = vmatpush.bf16.msrb.mxu0 %v2901_v2  ;;  %v2944_v2 = vld [vmem:[#allocation3 + $0x488] sm:$0xff] }
  0x6b   :  { %1843 = vmatpush.bf16.msrb.mxu1 %v2909_v3  ;;  %v2952_v3 = vld [vmem:[#allocation3 + $0x4c8] sm:$0xff] }
  0x6c   :  { %1856 = vmatpush.bf16.msrb.mxu2 %v2917_v4  ;;  %v45_v4 = vld [vmem:[%s3150_s0 + $0x40] sm:$0xff] }
  0x6d   :  { %1869 = vmatpush.bf16.msrb.mxu3 %v2925_v5  ;;  %v46_v5 = vld [vmem:[%s3150_s0 + $0x48] sm:$0xff] }
  0x6e   :  { %1831 = vmatpush.bf16.msrb.mxu0 %v2900_v6  ;;  %v2927_v6 = vld [vmem:[#allocation3 + $0x400] sm:$0xff] }
  0x6f   :  { %1844 = vmatpush.bf16.msrb.mxu1 %v2908_v7  ;;  %v2935_v7 = vld [vmem:[#allocation3 + $0x440] sm:$0xff] }
  0x70   :  { %1857 = vmatpush.bf16.msrb.mxu2 %v2916_v8  ;;  %v465_v8 = vunpack.c.l.b16 %v45_v4 }
  0x71   :  { %1870 = vmatpush.bf16.msrb.mxu3 %v2924_v9  ;;  %v467_v9 = vunpack.c.l.b16 %v46_v5 }
  0x72   :  { %1832 = vmatpush.bf16.msrb.mxu0 %v2899_v10  ;;  %v2943_v10 = vld [vmem:[#allocation3 + $0x480] sm:$0xff] }
  0x73   :  { %1845 = vmatpush.bf16.msrb.mxu1 %v2907_v11  ;;  %v2951_v11 = vld [vmem:[#allocation3 + $0x4c0] sm:$0xff] }
  0x74   :  { %1858 = vmatpush.bf16.msrb.mxu2 %v2915_v12  ;;  %v466_v12 = vunpack.c.h.b16 %v45_v4  ;;  %v2983_v4 = vld [vmem:[#allocation3 + $0x5c0] sm:$0xff] }
  0x75   :  { %1871 = vmatpush.bf16.msrb.mxu3 %v2923_v13  ;;  %v468_v13 = vunpack.c.h.b16 %v46_v5 }
  0x76   :  { %1833 = vmatpush.bf16.msrb.mxu0 %v2898_v14  ;;  %v2966_v14 = vld [vmem:[#allocation3 + $0x538] sm:$0xff] }
  0x77   :  { %1846 = vmatpush.bf16.msrb.mxu1 %v2906_v15  ;;  %v2974_v15 = vld [vmem:[#allocation3 + $0x578] sm:$0xff] }
  0x78   :  { %1859 = vmatpush.bf16.msrb.mxu2 %v2914_v16  ;;  %v2982_v16 = vld [vmem:[#allocation3 + $0x5b8] sm:$0xff] }
  0x79   :  { %1872 = vmatpush.bf16.msrb.mxu3 %v2922_v17  ;;  %v2990_v17 = vld [vmem:[#allocation3 + $0x5f8] sm:$0xff] }
  0x7a   :  { %1834 = vmatpush.bf16.msrb.mxu0 %v2897_v18  ;;  %v489_v18 = vpack.c.b16 %v465_v8, %v465_v8 }
  0x7b   :  { %1847 = vmatpush.bf16.msrb.mxu1 %v2905_v19  ;;  %v491_v19 = vpack.c.b16 %v467_v9, %v467_v9 }
  0x7c   :  { %1860 = vmatpush.bf16.msrb.mxu2 %v2913_v20  ;;  %v490_v20 = vpack.c.b16 %v466_v12, %v466_v12 }
  0x7d   :  { %1873 = vmatpush.bf16.msrb.mxu3 %v2921_v21  ;;  %v492_v21 = vpack.c.b16 %v468_v13, %v468_v13 }
  0x7e   :  { %1835 = vmatpush.bf16.msrb.mxu0 %v2896_v22  ;;  %v2965_v22 = vld [vmem:[#allocation3 + $0x530] sm:$0xff] }
  0x7f   :  { %1848 = vmatpush.bf16.msrb.mxu1 %v2904_v23  ;;  %v2973_v23 = vld [vmem:[#allocation3 + $0x570] sm:$0xff] }
  0x80   :  { %1861 = vmatpush.bf16.msrb.mxu2 %v2912_v24  ;;  %v2981_v24 = vld [vmem:[#allocation3 + $0x5b0] sm:$0xff] }
  0x81   :  { %1874 = vmatpush.bf16.msrb.mxu3 %v2920_v25  ;;  %v2989_v25 = vld [vmem:[#allocation3 + $0x5f0] sm:$0xff] }
  0x82   :  { %1836 = vmatpush.bf16.msrb.mxu0 %v2895_v28  ;;  %v2994_v28 = vld [vmem:[%s3152_s2] ss:$0 sm:$0xff] }
  0x83   :  { %1849 = vmatpush.bf16.msrb.mxu1 %v2903_v29  ;;  %v2980_v29 = vld [vmem:[#allocation3 + $0x5a8] sm:$0xff] }
  0x84   :  { %1862 = vmatpush.bf16.msrb.mxu2 %v2911_v32  ;;  %v2963_v32 = vld [vmem:[#allocation3 + $0x520] sm:$0xff] }
  0x85   :  { %1875 = vmatpush.bf16.msrb.mxu3 %v2919_v33  ;;  %1837 = vmatmul.bf16.vlgmr.msrb.gmra.mxu0 %v485_v40  ;;  %v2971_v33 = vld [vmem:[#allocation3 + $0x560] sm:$0xff]  ;;  %v2970_v40 = vld [vmem:[#allocation3 + $0x558] sm:$0xff] }
  0x86   :  { %1881 = vmatpush.bf16.msra.mxu0 %v2934_v36  ;;  %1850 = vmatmul.bf16.vlgmr.msrb.gmra.mxu1 %v486_v42  ;;  %v2979_v36 = vld [vmem:[#allocation3 + $0x5a0] sm:$0xff]  ;;  %v2986_v42 = vld [vmem:[#allocation3 + $0x5d8] sm:$0xff] }
  0x87   :  { %1894 = vmatpush.bf16.msra.mxu1 %v2942_v37  ;;  %1863 = vmatmul.bf16.vlgmr.msrb.gmra.mxu2 %v487_v41  ;;  %v2987_v37 = vld [vmem:[#allocation3 + $0x5e0] sm:$0xff]  ;;  %v2978_v41 = vld [vmem:[#allocation3 + $0x598] sm:$0xff] }
  0x88   :  { %1907 = vmatpush.bf16.msra.mxu2 %v2950_v38  ;;  %1876 = vmatmul.bf16.vlgmr.msrb.gmra.mxu3 %v488_v43 }
  0x89   :  { %1920 = vmatpush.bf16.msra.mxu3 %v2958_v39  ;;  %v2962_v39 = vld [vmem:[#allocation3 + $0x518] sm:$0xff] }
  0x8a   :  { %1882 = vmatpush.bf16.msra.mxu0 %v2933_v44 }
  0x8b   :  { %1895 = vmatpush.bf16.msra.mxu1 %v2941_v45 }
  0x8c   :  { %1908 = vmatpush.bf16.msra.mxu2 %v2949_v46 }
  0x8d   :  { %1921 = vmatpush.bf16.msra.mxu3 %v2957_v47  ;;  %v2961_v47 = vld [vmem:[#allocation3 + $0x510] sm:$0xff] }
  0x8e   :  { %1883 = vmatpush.bf16.msra.mxu0 %v2932_v48  ;;  %v2969_v48 = vld [vmem:[#allocation3 + $0x550] sm:$0xff] }
  0x8f   :  { %1896 = vmatpush.bf16.msra.mxu1 %v2940_v49 }
  0x90   :  { %1909 = vmatpush.bf16.msra.mxu2 %v2948_v50 }
  0x91   :  { %1922 = vmatpush.bf16.msra.mxu3 %v2956_v51  ;;  %v2977_v51 = vld [vmem:[#allocation3 + $0x590] sm:$0xff] }
  0x92   :  { %1884 = vmatpush.bf16.msra.mxu0 %v2931_v52  ;;  %v2985_v52 = vld [vmem:[#allocation3 + $0x5d0] sm:$0xff] }
  0x93   :  { %1897 = vmatpush.bf16.msra.mxu1 %v2939_v53  ;;  %v2960_v53 = vld [vmem:[#allocation3 + $0x508] sm:$0xff] }
  0x94   :  { %1910 = vmatpush.bf16.msra.mxu2 %v2947_v54  ;;  %v2968_v54 = vld [vmem:[#allocation3 + $0x548] sm:$0xff] }
  0x95   :  { %1923 = vmatpush.bf16.msra.mxu3 %v2955_v55  ;;  %v47_v55 = vld [vmem:[%s3150_s0 + $0x50] sm:$0xff] }
  0x96   :  { %1885 = vmatpush.bf16.msra.mxu0 %v2930_v56  ;;  %v2976_v56 = vld [vmem:[#allocation3 + $0x588] sm:$0xff] }
  0x97   :  { %1898 = vmatpush.bf16.msra.mxu1 %v2938_v57  ;;  %v2984_v57 = vld [vmem:[#allocation3 + $0x5c8] sm:$0xff] }
  0x98   :  { %1911 = vmatpush.bf16.msra.mxu2 %v2946_v58  ;;  %v48_v58 = vld [vmem:[%s3150_s0 + $0x58] sm:$0xff] }
  0x99   :  { %1924 = vmatpush.bf16.msra.mxu3 %v2954_v59 }
  0x9a   :  { %1886 = vmatpush.bf16.msra.mxu0 %v2929_v60 }
  0x9b   :  { %1899 = vmatpush.bf16.msra.mxu1 %v2937_v61  ;;  %v469_v61 = vunpack.c.l.b16 %v47_v55 }
  0x9c   :  { %1912 = vmatpush.bf16.msra.mxu2 %v2945_v62  ;;  %v470_v62 = vunpack.c.h.b16 %v47_v55  ;;  %v1989_v55 = vld [vmem:[%s3153_s3 + $0x18] sm:$0xff] }
  0x9d   :  { %1925 = vmatpush.bf16.msra.mxu3 %v2953_v63  ;;  %v2959_v63 = vld [vmem:[#allocation3 + $0x500] sm:$0xff]  ;;  %v493_v5 = vpack.c.b16 %v469_v61, %v469_v61 }
  0x9e   :  { %1887 = vmatpush.bf16.msra.mxu0 %v2928_v0  ;;  %v2967_v0 = vld [vmem:[#allocation3 + $0x540] sm:$0xff] }
  0x9f   :  { %1900 = vmatpush.bf16.msra.mxu1 %v2936_v1  ;;  %v471_v1 = vunpack.c.l.b16 %v48_v58 }
  0xa0   :  { %1913 = vmatpush.bf16.msra.mxu2 %v2944_v2  ;;  %v472_v2 = vunpack.c.h.b16 %v48_v58 }
  0xa1   :  { %1926 = vmatpush.bf16.msra.mxu3 %v2952_v3  ;;  %v2975_v3 = vld [vmem:[#allocation3 + $0x580] sm:$0xff] }
  0xa2   :  { %1888 = vmatpush.bf16.msra.mxu0 %v2927_v6  ;;  %v1682_v31 = vpop.f32.mrf.mxu0  ;;  %v494_v6 = vpack.c.b16 %v470_v62, %v470_v62  ;;  %v496_v8 = vpack.c.b16 %v472_v2, %v472_v2 }
  0xa3   :  { %1901 = vmatpush.bf16.msra.mxu1 %v2935_v7  ;;  %v1683_v34 = vadd.f32 %v2994_v28, %v1682_v31  ;;  %v1695_v35 = vpop.f32.mrf.mxu1  ;;  %v495_v7 = vpack.c.b16 %v471_v1, %v471_v1 }
  0xa4   :  { %1914 = vmatpush.bf16.msra.mxu2 %v2943_v10 }
  0xa5   :  { %1927 = vmatpush.bf16.msra.mxu3 %v2951_v11  ;;  %1889 = vmatmul.bf16.vlgmr.msra.gmra.mxu0 %v489_v18  ;;  %v1696_v38 = vadd.f32 %v1695_v35, %v1683_v34 }
  0xa6   :  { %1933 = vmatpush.bf16.msrb.mxu0 %v2966_v14  ;;  %1902 = vmatmul.bf16.vlgmr.msra.gmra.mxu1 %v490_v20 }
  0xa7   :  { %1946 = vmatpush.bf16.msrb.mxu1 %v2974_v15  ;;  %1915 = vmatmul.bf16.vlgmr.msra.gmra.mxu2 %v491_v19 }
  0xa8   :  { %1959 = vmatpush.bf16.msrb.mxu2 %v2982_v16  ;;  %1928 = vmatmul.bf16.vlgmr.msra.gmra.mxu3 %v492_v21 }
  0xa9   :  { %1972 = vmatpush.bf16.msrb.mxu3 %v2990_v17 }
  0xaa   :  { %1934 = vmatpush.bf16.msrb.mxu0 %v2965_v22  ;;  %v1708_v43 = vpop.f32.mrf.mxu2  ;;  %v1684_v46 = vpop.f32.mrf.mxu0 }
  0xab   :  { %1947 = vmatpush.bf16.msrb.mxu1 %v2973_v23  ;;  %v1709_v44 = vadd.f32 %v1708_v43, %v1696_v38  ;;  %v1721_v45 = vpop.f32.mrf.mxu3  ;;  %v1697_v50 = vpop.f32.mrf.mxu1  ;;  %v2000_v38 = vld [vmem:[%s3153_s3 + $0x70] sm:$0xff]  ;;  %v1997_v43 = vld [vmem:[%s3153_s3 + $0x58] sm:$0xff] }
  0xac   :  { %1960 = vmatpush.bf16.msrb.mxu2 %v2981_v24  ;;  %v1996_v46 = vld [vmem:[%s3153_s3 + $0x50] sm:$0xff] }
  0xad   :  { %1973 = vmatpush.bf16.msrb.mxu3 %v2989_v25  ;;  %v1722_v49 = vadd.f32 %v1721_v45, %v1709_v44  ;;  %v1992_v50 = vld [vmem:[%s3153_s3 + $0x30] sm:$0xff] }
  0xae   :  { %1935 = vmatpush.bf16.msrb.mxu0 %v2964_v26 }
  0xaf   :  { %1948 = vmatpush.bf16.msrb.mxu1 %v2972_v27 }
  0xb0   :  { %1961 = vmatpush.bf16.msrb.mxu2 %v2980_v29 }
  0xb1   :  { %1974 = vmatpush.bf16.msrb.mxu3 %v2988_v30 }
  0xb2   :  { %1936 = vmatpush.bf16.msrb.mxu0 %v2963_v32  ;;  %v1710_v59 = vpop.f32.mrf.mxu2 }
  0xb3   :  { %1949 = vmatpush.bf16.msrb.mxu1 %v2971_v33  ;;  %v1723_v60 = vpop.f32.mrf.mxu3 }
  0xb4   :  { %1962 = vmatpush.bf16.msrb.mxu2 %v2979_v36  ;;  %v1987_v60 = vld [vmem:[%s3153_s3 + $0x8] sm:$0xff] }
  0xb5   :  { %1975 = vmatpush.bf16.msrb.mxu3 %v2987_v37  ;;  %v2001_v37 = vld [vmem:[%s3153_s3 + $0x78] sm:$0xff] }
  0xb6   :  { %1937 = vmatpush.bf16.msrb.mxu0 %v2962_v39 }
  0xb7   :  { %1950 = vmatpush.bf16.msrb.mxu1 %v2970_v40 }
  0xb8   :  { %1963 = vmatpush.bf16.msrb.mxu2 %v2978_v41  ;;  %v1999_v41 = vld [vmem:[%s3153_s3 + $0x68] sm:$0xff] }
  0xb9   :  { %1976 = vmatpush.bf16.msrb.mxu3 %v2986_v42  ;;  %v1998_v42 = vld [vmem:[%s3153_s3 + $0x60] sm:$0xff] }
  0xba   :  { %1938 = vmatpush.bf16.msrb.mxu0 %v2961_v47  ;;  %v1995_v47 = vld [vmem:[%s3153_s3 + $0x48] sm:$0xff] }
  0xbb   :  { %1951 = vmatpush.bf16.msrb.mxu1 %v2969_v48  ;;  %v1994_v48 = vld [vmem:[%s3153_s3 + $0x40] sm:$0xff] }
  0xbc   :  { %1964 = vmatpush.bf16.msrb.mxu2 %v2977_v51  ;;  %v1991_v51 = vld [vmem:[%s3153_s3 + $0x28] sm:$0xff] }
  0xbd   :  { %1977 = vmatpush.bf16.msrb.mxu3 %v2985_v52 }
  0xbe   :  { %1939 = vmatpush.bf16.msrb.mxu0 %v2960_v53  ;;  %v1990_v53 = vld [vmem:[%s3153_s3 + $0x20] sm:$0xff] }
  0xbf   :  { %1952 = vmatpush.bf16.msrb.mxu1 %v2968_v54 }
  0xc0   :  { %1965 = vmatpush.bf16.msrb.mxu2 %v2976_v56  ;;  %v1988_v56 = vld [vmem:[%s3153_s3 + $0x10] sm:$0xff] }
  0xc1   :  { %1978 = vmatpush.bf16.msrb.mxu3 %v2984_v57 }
  0xc2   :  { %1940 = vmatpush.bf16.msrb.mxu0 %v2959_v63  ;;  %v1734_v9 = vpop.f32.mrf.mxu0  ;;  %v1986_v63 = vld [vmem:[%s3153_s3] sm:$0xff] }
  0xc3   :  { %1953 = vmatpush.bf16.msrb.mxu1 %v2967_v0  ;;  %v1735_v10 = vadd.f32 %v1734_v9, %v1722_v49  ;;  %v1747_v11 = vpop.f32.mrf.mxu1  ;;  %v1993_v49 = vld [vmem:[%s3153_s3 + $0x38] sm:$0xff] }
  0xc4   :  { %1966 = vmatpush.bf16.msrb.mxu2 %v2975_v3 }
  0xc5   :  { %1979 = vmatpush.bf16.msrb.mxu3 %v2983_v4  ;;  %1941 = vmatmul.bf16.vlgmr.msrb.gmra.mxu0 %v493_v5  ;;  %v1748_v12 = vadd.f32 %v1747_v11, %v1735_v10 }
  0xc6   :  { %1954 = vmatmul.bf16.vlgmr.msrb.gmra.mxu1 %v494_v6  ;;  %2004 = vmatpush.msra.mxu0 %v2001_v37 }
  0xc7   :  { %1967 = vmatmul.bf16.vlgmr.msrb.gmra.mxu2 %v495_v7 }
  0xc8   :  { %1980 = vmatmul.bf16.vlgmr.msrb.gmra.mxu3 %v496_v8  ;;  %2005 = vmatpush.msra.mxu0 %v2000_v38 }
  0xca   :  { %v1760_v13 = vpop.f32.mrf.mxu2  ;;  %v1736_v16 = vpop.f32.mrf.mxu0  ;;  %2006 = vmatpush.msra.mxu0 %v1999_v41 }
  0xcb   :  { %v1761_v14 = vadd.f32 %v1760_v13, %v1748_v12  ;;  %v1773_v15 = vpop.f32.mrf.mxu3  ;;  %v1749_v18 = vpop.f32.mrf.mxu1 }
  0xcc   :  { %2007 = vmatpush.msra.mxu0 %v1998_v42 }
  0xcd   :  { %v1774_v17 = vadd.f32 %v1773_v15, %v1761_v14 }
  0xce   :  { %2008 = vmatpush.msra.mxu0 %v1997_v43 }
  0xd0   :  { %2009 = vmatpush.msra.mxu0 %v1996_v46 }
  0xd2   :  { %v1762_v19 = vpop.f32.mrf.mxu2  ;;  %2010 = vmatpush.msra.mxu0 %v1995_v47 }
  0xd3   :  { %v1775_v20 = vpop.f32.mrf.mxu3 }
  0xd4   :  { %2011 = vmatpush.msra.mxu0 %v1994_v48 }
  0xd6   :  { %2012 = vmatpush.msra.mxu0 %v1993_v49 }
  0xd8   :  { %2013 = vmatpush.msra.mxu0 %v1992_v50 }
  0xda   :  { %2014 = vmatpush.msra.mxu0 %v1991_v51 }
  0xdc   :  { %2015 = vmatpush.msra.mxu0 %v1990_v53 }
  0xde   :  { %2016 = vmatpush.msra.mxu0 %v1989_v55 }
  0xe0   :  { %2017 = vmatpush.msra.mxu0 %v1988_v56 }
  0xe2   :  { %v1786_v21 = vpop.f32.mrf.mxu0  ;;  %2018 = vmatpush.msra.mxu0 %v1987_v60 }
  0xe3   :  { %v1787_v22 = vadd.f32 %v1786_v21, %v1774_v17  ;;  %v1799_v23 = vpop.f32.mrf.mxu1 }
  0xe4   :  { %2019 = vmatpush.msra.mxu0 %v1986_v63 }
  0xe5   :  { %v1800_v24 = vadd.f32 %v1799_v23, %v1787_v22  ;;  %v2003_v22 = vstv %s3154_s4 }
  0xea   :  { %v1812_v25 = vpop.f32.mrf.mxu2  ;;  %v1788_v28 = vpop.f32.mrf.mxu0 }
  0xeb   :  { %v1813_v26 = vadd.f32 %v1812_v25, %v1800_v24  ;;  %v1825_v27 = vpop.f32.mrf.mxu3  ;;  %v1801_v30 = vpop.f32.mrf.mxu1 }
  0xed   :  { %v1826_v29 = vadd.f32 %v1825_v27, %v1813_v26 }
  0xf2   :  { %v1814_v31 = vpop.f32.mrf.mxu2 }
  0xf3   :  { %v1827_v32 = vpop.f32.mrf.mxu3 }
 0x102   :  { %v1838_v33 = vpop.f32.mrf.mxu0 }
 0x103   :  { %v1851_v34 = vpop.f32.mrf.mxu1  ;;  %v1839_v58 = vadd.f32 %v1838_v33, %v1826_v29 }
 0x105   :  { %v1852_v0 = vadd.f32 %v1851_v34, %v1839_v58 }
 0x10a   :  { %v1864_v35 = vpop.f32.mrf.mxu2  ;;  %v1840_v39 = vpop.f32.mrf.mxu0 }
 0x10b   :  { %v1877_v36 = vpop.f32.mrf.mxu3  ;;  %v1853_v40 = vpop.f32.mrf.mxu1  ;;  %v1865_v1 = vadd.f32 %v1864_v35, %v1852_v0 }
 0x10d   :  { %v1878_v4 = vadd.f32 %v1877_v36, %v1865_v1 }
 0x112   :  { %v1866_v44 = vpop.f32.mrf.mxu2 }
 0x113   :  { %v1879_v45 = vpop.f32.mrf.mxu3 }
 0x122   :  { %v1890_v52 = vpop.f32.mrf.mxu0 }
 0x123   :  { %v1903_v54 = vpop.f32.mrf.mxu1  ;;  %v1891_v5 = vadd.f32 %v1890_v52, %v1878_v4 }
 0x125   :  { %v1904_v6 = vadd.f32 %v1903_v54, %v1891_v5 }
 0x12a   :  { %v1916_v57 = vpop.f32.mrf.mxu2  ;;  %v1892_v61 = vpop.f32.mrf.mxu0 }
 0x12b   :  { %v1929_v59 = vpop.f32.mrf.mxu3  ;;  %v1905_v62 = vpop.f32.mrf.mxu1  ;;  %v1917_v7 = vadd.f32 %v1916_v57, %v1904_v6 }
 0x12d   :  { %v1930_v8 = vadd.f32 %v1929_v59, %v1917_v7 }
 0x132   :  { %v1918_v2 = vpop.f32.mrf.mxu2 }
 0x133   :  { %v1931_v3 = vpop.f32.mrf.mxu3 }
 0x142   :  { %v1942_v9 = vpop.f32.mrf.mxu0 }
 0x143   :  { %v1955_v10 = vpop.f32.mrf.mxu1  ;;  %v1943_v11 = vadd.f32 %v1942_v9, %v1930_v8 }
 0x145   :  { %v1956_v12 = vadd.f32 %v1955_v10, %v1943_v11 }
 0x14a   :  { %v1968_v13 = vpop.f32.mrf.mxu2  ;;  %v1944_v16 = vpop.f32.mrf.mxu0 }
 0x14b   :  { %v1981_v14 = vpop.f32.mrf.mxu3  ;;  %v1969_v15 = vadd.f32 %v1968_v13, %v1956_v12  ;;  %v1957_v17 = vpop.f32.mrf.mxu1 }
 0x14d   :  { %v1982_v18 = vadd.f32 %v1981_v14, %v1969_v15 }
 0x14f   :  { %v1985_v19 = vmax.f32 %v1982_v18, 0.0 }
 0x151   :  { %2020 = vmatmul.f32.vlgmr.msra.gmra.mxu0 %v1985_v19 }
 0x152   :  { %v1970_v20 = vpop.f32.mrf.mxu2 }
 0x153   :  { %v1983_v21 = vpop.f32.mrf.mxu3 }
 0x1ce   :  { %v2021_v23 = vpop.f32.mrf.mxu0 }
 0x1cf   :  { %v2022_v24 = vadd.f32 %v2021_v23, %v2003_v22 }
 0x1d1   :  { %2025 = vst.msk [vmem:[%s3155_s5] sm:$0xff] %vm2024_vm0, %v2022_v24 }
 0x1d2   :  { %2030 = vsyncpa [#allocation4], 1 }

</bundles_post_ra>
